<compile_context>
chip_gen: v7x
topology: tpu7x:2x2x1
jax: 0.10.0
libtpu: 0.0.40
codegen_flags: <defaults>
</compile_context>

<pallas_src>
import jax
import jax.numpy as jnp
import numpy as np
from jax.experimental import pallas as pl
from jax.experimental.pallas import tpu as pltpu

GAMMA = 0.5  # matches OrthogonalProjectionLoss(gamma=0.5)


def _round_up(x, m):
    return ((x + m - 1) // m) * m


def _normalize_kernel(x_ref, o_ref):
    # F.normalize(x, p=2, dim=1) with eps=1e-12:
    #   x / max(||x||, 1e-12)  ==  x * rsqrt(max(||x||^2, 1e-24))
    # rsqrt goes to the EUP slot (nearly free); no f32 divide.
    x = x_ref[...]
    ssq = jnp.sum(x * x, axis=1, keepdims=True)
    inv = jax.lax.rsqrt(jnp.maximum(ssq, 1e-24))
    o_ref[...] = (x * inv).astype(o_ref.dtype)


def _gram_opl_kernel(fr_ref, fc_ref, lr_ref, lc_ref, out_ref):
    i = pl.program_id(0)
    j = pl.program_id(1)
    ti = fr_ref.shape[0]
    tj = fc_ref.shape[1]

    # Plain (M, K) x (K, N) tile on the MXU, f32 accumulation.  Operands are
    # already normalized (and optionally bf16-cast) by the wrapper.
    dot = jnp.dot(fr_ref[...], fc_ref[...], preferred_element_type=jnp.float32)

    # Same-label mask from int32 labels: (ti,1) == (1,tj) -> (ti,tj).
    same = lr_ref[...] == lc_ref[...]

    # Exclude the diagonal in-kernel (exact, also under bf16 matmul).
    row_idx = jax.lax.broadcasted_iota(jnp.int32, (ti, tj), 0) + i * ti
    col_idx = jax.lax.broadcasted_iota(jnp.int32, (ti, tj), 1) + j * tj
    not_self = row_idx != col_idx

    pos_s = jnp.sum(jnp.where(same & not_self, dot, 0.0))  # scalar
    neg_s = jnp.sum(jnp.where(same, 0.0, dot))             # scalar

    # Pack the two scalars into one lane-dense (8, 128) block:
    # [0, 0] = pos partial, [0, 1] = neg partial, rest zero.
    sub = jax.lax.broadcasted_iota(jnp.int32, (8, 128), 0)
    lane = jax.lax.broadcasted_iota(jnp.int32, (8, 128), 1)
    partial = (jnp.where((sub == 0) & (lane == 0), pos_s, 0.0)
               + jnp.where((sub == 0) & (lane == 1), neg_s, 0.0))

    @pl.when(j == 0)
    def _init():
        out_ref[...] = partial

    @pl.when(j > 0)
    def _acc():
        out_ref[...] = out_ref[...] + partial


def orthogonal_projection_loss(features, labels, gamma=GAMMA,
                               mxu_dtype=jnp.bfloat16, max_tile=512):
    """features: (N, D) float, labels: (N,) int -> scalar float32 loss."""
    features = jnp.asarray(features, jnp.float32)
    labels = jnp.asarray(labels, jnp.int32)
    n, d = features.shape

    d_pad = _round_up(d, 128)
    tile = min(max_tile, _round_up(n, 128))
    n_pad = _round_up(n, tile)
    grid_i = n_pad // tile
    grid_j = n_pad // tile

    # Zero-padded rows contribute exactly 0 to every sum (their normalized
    # feature vector is 0), so padding labels need no sentinels.
    feat_pad = jnp.pad(features, ((0, n_pad - n), (0, d_pad - d)))
    lab_pad = jnp.pad(labels, (0, n_pad - n))
    lab_col = lab_pad.reshape(n_pad, 1)
    lab_row = lab_pad.reshape(1, n_pad)

    # --- 1) One-pass L2 normalization (+ cast to the MXU dtype). ------------
    fn = pl.pallas_call(
        _normalize_kernel,
        out_shape=jax.ShapeDtypeStruct((n_pad, d_pad), mxu_dtype),
        grid_spec=pltpu.PrefetchScalarGridSpec(
            num_scalar_prefetch=0,
            grid=(grid_i,),
            in_specs=[pl.BlockSpec((tile, d_pad), lambda i: (i, 0))],
            out_specs=pl.BlockSpec((tile, d_pad), lambda i: (i, 0))),
        compiler_params=pltpu.CompilerParams(
            dimension_semantics=("parallel",)),
    )(feat_pad)

    # One-time wrapper transpose so the kernel's RHS block is (K, tile):
    # no per-tile XLU transpose inside the Gram loop.
    fn_t = fn.T  # (d_pad, n_pad)

    # --- 2) Tiled Gram + masked global sums. ---------------------------------
    out = pl.pallas_call(
        _gram_opl_kernel,
        out_shape=jax.ShapeDtypeStruct((8 * grid_i, 128), jnp.float32),
        grid_spec=pltpu.PrefetchScalarGridSpec(
            num_scalar_prefetch=0,
            grid=(grid_i, grid_j),
            in_specs=[
                pl.BlockSpec((tile, d_pad), lambda i, j: (i, 0)),  # fn rows
                pl.BlockSpec((d_pad, tile), lambda i, j: (0, j)),  # fn^T cols
                pl.BlockSpec((tile, 1), lambda i, j: (i, 0)),      # row labels
                pl.BlockSpec((1, tile), lambda i, j: (0, j)),      # col labels
            ],
            out_specs=pl.BlockSpec((8, 128), lambda i, j: (i, 0)),
        ),
        compiler_params=pltpu.CompilerParams(
            dimension_semantics=("parallel", "arbitrary")),
    )(fn, fn_t, lab_col, lab_row)

    pos_sum = jnp.sum(out[:, 0])
    neg_sum = jnp.sum(out[:, 1])

    # Exact pair counts from the labels alone (O(N^2) int compares, no
    # feature data; replaces the in-kernel count stream).
    same_cnt = jnp.sum(labels[:, None] == labels[None, :]).astype(jnp.float32)
    pos_cnt = same_cnt - float(n)                 # same-label, excl. diagonal
    neg_cnt = float(n) * float(n) - same_cnt      # different-label pairs

    pos_pairs_mean = pos_sum / (pos_cnt + 1e-6)
    neg_pairs_mean = neg_sum / (neg_cnt + 1e-6)
    return 1.0 - pos_pairs_mean + gamma * neg_pairs_mean


def _reference(features, labels, gamma=GAMMA):
    f = jnp.asarray(features, jnp.float32)
    nrm = jnp.sqrt(jnp.sum(f * f, axis=1, keepdims=True))
    fn = f / jnp.maximum(nrm, 1e-12)
    lab = labels.reshape(-1, 1)
    mask = lab == lab.T
    eye = jnp.eye(mask.shape[0], dtype=bool)
    mask_pos = jnp.where(mask & ~eye, 1.0, 0.0)
    mask_neg = jnp.where(~mask, 1.0, 0.0)
    dot = fn @ fn.T
    pos = jnp.sum(mask_pos * dot) / (jnp.sum(mask_pos) + 1e-6)
    neg = jnp.sum(mask_neg * dot) / (jnp.sum(mask_neg) + 1e-6)
    return 1.0 - pos + gamma * neg


if __name__ == "__main__":
    key = jax.random.PRNGKey(0)
    k_feat, k_lab = jax.random.split(key)

    # Small shapes consistent with the module's forward (N proposals, D feats).
    N, D = 8, 32
    features = jax.random.normal(k_feat, (N, D), dtype=jnp.float32)
    labels = jax.random.randint(k_lab, (N,), 0, 4, dtype=jnp.int32)

    ref = np.asarray(jax.block_until_ready(_reference(features, labels)))

    # Exact-parity path (f32 MXU).
    loss_f32 = np.asarray(jax.block_until_ready(
        orthogonal_projection_loss(features, labels, mxu_dtype=jnp.float32)))
    assert np.allclose(loss_f32, ref, rtol=1e-5, atol=1e-5), (loss_f32, ref)

    # Default perf path (bf16 operands, f32 accumulation): ~1e-3 abs error.
    loss_bf16 = np.asarray(jax.block_until_ready(
        orthogonal_projection_loss(features, labels)))
    assert np.allclose(loss_bf16, ref, rtol=2e-2, atol=2e-2), (loss_bf16, ref)

    # Multi-tile (padded, gridded, j-accumulating) path with forced small tiles.
    k_feat2, k_lab2 = jax.random.split(jax.random.PRNGKey(0), 2)
    N2, D2 = 300, 40
    features2 = jax.random.normal(k_feat2, (N2, D2), dtype=jnp.float32)
    labels2 = jax.random.randint(k_lab2, (N2,), 0, 7, dtype=jnp.int32)
    ref2 = np.asarray(jax.block_until_ready(_reference(features2, labels2)))

    loss2_f32 = np.asarray(jax.block_until_ready(
        orthogonal_projection_loss(features2, labels2,
                                   mxu_dtype=jnp.float32, max_tile=128)))
    assert np.allclose(loss2_f32, ref2, rtol=1e-4, atol=1e-5), (loss2_f32, ref2)

    loss2_bf16 = np.asarray(jax.block_until_ready(
        orthogonal_projection_loss(features2, labels2)))
    assert np.allclose(loss2_bf16, ref2, rtol=2e-2, atol=2e-2), (loss2_bf16, ref2)

    print("KERNEL_OK")
</pallas_src>

<mosaic_0001>
module attributes {stable_mosaic.version = 11 : i64} {
  func.func @_normalize_kernel(%arg0: i32, %arg1: memref<128x128xf32, #tpu.memory_space<vmem>>, %arg2: memref<128x128xf32, #tpu.memory_space<vmem>>) attributes {dimension_semantics = [#tpu.dimension_semantics<parallel>], iteration_bounds = array<i64: 1>, scalar_prefetch = 0 : i64, scratch_operands = 0 : i64, tpu.core_type = #tpu.core_type<tc>, window_params = [{transform_indices = @transform_0, window_bounds = array<i64: 128, 128>}, {transform_indices = @transform_1, window_bounds = array<i64: 128, 128>}]} {
    %c0 = arith.constant 0 : index
    %c0_0 = arith.constant 0 : index
    %0 = vector.load %arg1[%c0, %c0_0] : memref<128x128xf32, #tpu.memory_space<vmem>>, vector<128x128xf32>
    %1 = arith.mulf %0, %0 : vector<128x128xf32>
    %cst = arith.constant dense<0.000000e+00> : vector<128xf32>
    %2 = vector.multi_reduction <add>, %1, %cst [1] : vector<128x128xf32> to vector<128xf32>
    %3 = vector.shape_cast %2 : vector<128xf32> to vector<128x1xf32>
    %cst_1 = arith.constant 1.000000e-24 : f32
    %4 = vector.broadcast %cst_1 : f32 to vector<128x1xf32>
    %5 = arith.maximumf %3, %4 : vector<128x1xf32>
    %6 = math.rsqrt %5 : vector<128x1xf32>
    %7 = vector.broadcast %6 : vector<128x1xf32> to vector<128x128xf32>
    %8 = arith.mulf %0, %7 : vector<128x128xf32>
    %c0_2 = arith.constant 0 : index
    %c0_3 = arith.constant 0 : index
    %9 = vector.load %arg2[%c0_2, %c0_3] : memref<128x128xf32, #tpu.memory_space<vmem>>, vector<128x128xf32>
    tpu.vector_store %arg2[%c0_2, %c0_3], %8 {strides = array<i32>} : memref<128x128xf32, #tpu.memory_space<vmem>>, vector<128x128xf32>,
    return
  }
  func.func @transform_0(%arg0: i32) -> (i32, i32) {
    %c0_i32 = arith.constant 0 : i32
    %c0_i32_0 = arith.constant 0 : i32
    return %arg0, %c0_i32 : i32, i32
  }
  func.func @transform_1(%arg0: i32) -> (i32, i32) {
    %c0_i32 = arith.constant 0 : i32
    %c0_i32_0 = arith.constant 0 : i32
    return %arg0, %c0_i32 : i32, i32
  }
}

</mosaic_0001>

<bundles_post_ra>
// kernel: tpu_custom_call.1
= control target key start
LH: loop header
LB: loop body
LE: loop exit
PB: predicated region body
PF: predicated region fallthrough
CT: control target
= control target key end

     0   :  { %6 = vsyncpa [#allocation3], 0  ;;  %s376_s0 = inlined_call_operand.hbm [shape: f32[128,128], index: 0, kind: input, shape index: {}]   ;;  %s377_s1 = inlined_call_operand.hbm [shape: f32[128,128], index: 1, kind: output, shape index: {}]  }
   0x1   :  { %7 = vsyncpa [#allocation4], 0  ;;  %s252_s6 = smov [#allocation2]   ;;  %s204_s10 = scalar_lea.hbm %s376_s0, 2048 }
   0x2   :  { %s13_s7 = sshll.u32 %s252_s6, 4  ;;  %p205_p0 = scmp.ne.s32.totalorder %s376_s0, %s204_s10  ;;  %s14_s7 = int_to_ptr.vmem [resolvable:$true] %s13_s7 }
   0x3   :  { %p208_p1 = scmp.lt.u32.totalorder %s204_s10, %s376_s0 }
   0x5   :  { %p210_p2 = pnand %p208_p1, %p205_p0 }
   0x7   :  { %213 = shalt.err (!%p210_p2)
}
   0x8   :  { %s214_s15 = scalar_lea.vmem %s14_s7, 2048  ;;  %p219_p4 = scmp.lt.s32.totalorder %s14_s7, %s14_s7 }
   0x9   :  { %p215_p3 = scmp.ne.s32.totalorder %s14_s7, %s214_s15  ;;  %p220_p5 = scmp.lt.s32.totalorder %s214_s15, %s214_s15 }
   0xb   :  { %p221_p6 = por %p220_p5, %p219_p4 }
   0xd   :  { %p222_p7 = pnand %p221_p6, %p215_p3 }
   0xf   :  { %225 = shalt.err (!%p222_p7)
}
  0x10   :  { %s253_s16 = smov 128   ;;  %s254_s17 = smov 8  }
  0x11   :  { %19 = dma.hbm_to_vmem [thread:$0]  %s376_s0, 2048, %s14_s7, [#allocation3], %s253_s16, %s253_s16, %s254_s17  }
  0x12   :  { %248 = dma.done.wait [#allocation3], 2048  }
  0x13   :  { %249 = vsyncadd [#allocation3], 4294965248  ;;  %v281_v0 = vld [vmem:[#allocation2 + $0x10] sm:$0xff]  ;;  %v283_v1 = vld [vmem:[#allocation2] sm:$0xff]  ;;  %s255_s0 = smov [#allocation5]  }
  0x14   :  { %v285_v2 = vld [vmem:[#allocation2 + $0x18] sm:$0xff]  ;;  %v41_v3 = vmul.f32 %v281_v0, %v281_v0  ;;  %v39_v4 = vmul.f32 %v283_v1, %v283_v1  ;;  %v291_v5 = vld [vmem:[#allocation2 + $0x8] sm:$0xff]  ;;  %v299_v9 = vld [vmem:[#allocation2 + $0x20] sm:$0xff]  ;;  %s156_s20 = sshll.u32 %s255_s0, 4  ;;  %s157_s20 = int_to_ptr.vmem [resolvable:$true] %s156_s20 }
  0x15   :  { %v42_v6 = vmul.f32 %v285_v2, %v285_v2  ;;  %v40_v7 = vmul.f32 %v291_v5, %v291_v5  ;;  %v297_v8 = vld [vmem:[#allocation2 + $0x28] sm:$0xff]  ;;  %v43_v11 = vmul.f32 %v299_v9, %v299_v9  ;;  %v305_v12 = vld [vmem:[#allocation2 + $0x38] sm:$0xff]  ;;  %v307_v13 = vld [vmem:[#allocation2 + $0x30] sm:$0xff]  ;;  %s226_s21 = scalar_lea.vmem %s157_s20, 2048  ;;  %p231_p9 = scmp.lt.s32.totalorder %s157_s20, %s157_s20 }
  0x16   :  { %59 = vadd.xlane.f32.xlu1 %v41_v3  ;;  %55 = vadd.xlane.f32.xlu0 %v39_v4  ;;  %v44_v10 = vmul.f32 %v297_v8, %v297_v8  ;;  %v46_v14 = vmul.f32 %v305_v12, %v305_v12  ;;  %v45_v15 = vmul.f32 %v307_v13, %v307_v13  ;;  %v313_v16 = vld [vmem:[#allocation2 + $0x48] sm:$0xff]  ;;  %v315_v17 = vld [vmem:[#allocation2 + $0x40] sm:$0xff]  ;;  %v321_v20 = vld [vmem:[#allocation2 + $0x58] sm:$0xff]  ;;  %p227_p8 = scmp.ne.s32.totalorder %s157_s20, %s226_s21  ;;  %p232_p10 = scmp.lt.s32.totalorder %s226_s21, %s226_s21 }
  0x17   :  { %v48_v18 = vmul.f32 %v313_v16, %v313_v16  ;;  %v47_v19 = vmul.f32 %v315_v17, %v315_v17  ;;  %v323_v21 = vld [vmem:[#allocation2 + $0x50] sm:$0xff]  ;;  %v50_v22 = vmul.f32 %v321_v20, %v321_v20  ;;  %v329_v24 = vld [vmem:[#allocation2 + $0x68] sm:$0xff]  ;;  %v331_v25 = vld [vmem:[#allocation2 + $0x60] sm:$0xff] }
  0x18   :  { %v49_v23 = vmul.f32 %v323_v21, %v323_v21  ;;  %v52_v26 = vmul.f32 %v329_v24, %v329_v24  ;;  %v51_v27 = vmul.f32 %v331_v25, %v331_v25  ;;  %v337_v28 = vld [vmem:[#allocation2 + $0x78] sm:$0xff]  ;;  %v339_v29 = vld [vmem:[#allocation2 + $0x70] sm:$0xff]  ;;  %p233_p11 = por %p232_p10, %p231_p9 }
  0x19   :  { %v54_v30 = vmul.f32 %v337_v28, %v337_v28  ;;  %v53_v31 = vmul.f32 %v339_v29, %v339_v29 }
  0x1a   :  { %61 = vadd.xlane.f32.xlu1 %v42_v6  ;;  %57 = vadd.xlane.f32.xlu0 %v40_v7  ;;  %p234_p12 = pnand %p233_p11, %p227_p8 }
  0x1e   :  { %65 = vadd.xlane.f32.xlu1 %v44_v10  ;;  %63 = vadd.xlane.f32.xlu0 %v43_v11 }
  0x22   :  { %69 = vadd.xlane.f32.xlu1 %v46_v14  ;;  %67 = vadd.xlane.f32.xlu0 %v45_v15 }
  0x26   :  { %73 = vadd.xlane.f32.xlu1 %v48_v18  ;;  %71 = vadd.xlane.f32.xlu0 %v47_v19 }
  0x2a   :  { %77 = vadd.xlane.f32.xlu1 %v50_v22  ;;  %75 = vadd.xlane.f32.xlu0 %v49_v23 }
  0x2e   :  { %81 = vadd.xlane.f32.xlu1 %v52_v26  ;;  %79 = vadd.xlane.f32.xlu0 %v51_v27 }
  0x32   :  { %85 = vadd.xlane.f32.xlu1 %v54_v30  ;;  %83 = vadd.xlane.f32.xlu0 %v53_v31 }
  0xa3   :  { %v60_v32 = vpop.xlane.xlu1 %59  ;;  %v56_v33 = vpop.xlane.xlu0 %55 }
  0xa4   :  { %v89_v34 = vmax.f32 %v60_v32, 1e-24  ;;  %v87_v35 = vmax.f32 %v56_v33, 1e-24 }
  0xa6   :  { %172 = vrsqrt.f32 %v89_v34 }
  0xa7   :  { %174 = vrsqrt.f32 %v87_v35  ;;  %v62_v36 = vpop.xlane.xlu1 %61  ;;  %v58_v37 = vpop.xlane.xlu0 %57 }
  0xa8   :  { %v90_v38 = vmax.f32 %v62_v36, 1e-24  ;;  %v88_v39 = vmax.f32 %v58_v37, 1e-24 }
  0xaa   :  { %176 = vrsqrt.f32 %v90_v38 }
  0xab   :  { %178 = vrsqrt.f32 %v88_v39  ;;  %v66_v40 = vpop.xlane.xlu1 %65  ;;  %v64_v41 = vpop.xlane.xlu0 %63 }
  0xac   :  { %v92_v42 = vmax.f32 %v66_v40, 1e-24  ;;  %v91_v43 = vmax.f32 %v64_v41, 1e-24 }
  0xae   :  { %180 = vrsqrt.f32 %v92_v42 }
  0xaf   :  { %182 = vrsqrt.f32 %v91_v43  ;;  %v70_v44 = vpop.xlane.xlu1 %69  ;;  %v68_v45 = vpop.xlane.xlu0 %67 }
  0xb0   :  { %v173_v46 = vpop.eup %172  ;;  %v94_v47 = vmax.f32 %v70_v44, 1e-24  ;;  %v93_v48 = vmax.f32 %v68_v45, 1e-24 }
  0xb1   :  { %v175_v49 = vpop.eup %174  ;;  %v121_v50 = vmul.f32 %v173_v46, %v281_v0 }
  0xb2   :  { %v119_v51 = vmul.f32 %v175_v49, %v283_v1  ;;  %184 = vrsqrt.f32 %v94_v47 }
  0xb3   :  { %137 = vst [vmem:[#allocation5 + $0x10] sm:$0xff] %v121_v50  ;;  %186 = vrsqrt.f32 %v93_v48  ;;  %v74_v52 = vpop.xlane.xlu1 %73  ;;  %v72_v53 = vpop.xlane.xlu0 %71 }
  0xb4   :  { %v177_v54 = vpop.eup %176  ;;  %135 = vst [vmem:[#allocation5] sm:$0xff] %v119_v51  ;;  %v96_v55 = vmax.f32 %v74_v52, 1e-24  ;;  %v95_v56 = vmax.f32 %v72_v53, 1e-24 }
  0xb5   :  { %v179_v57 = vpop.eup %178  ;;  %v122_v58 = vmul.f32 %v177_v54, %v285_v2 }
  0xb6   :  { %v120_v59 = vmul.f32 %v179_v57, %v291_v5  ;;  %188 = vrsqrt.f32 %v96_v55 }
  0xb7   :  { %138 = vst [vmem:[#allocation5 + $0x18] sm:$0xff] %v122_v58  ;;  %190 = vrsqrt.f32 %v95_v56  ;;  %v78_v60 = vpop.xlane.xlu1 %77  ;;  %v76_v61 = vpop.xlane.xlu0 %75 }
  0xb8   :  { %v181_v62 = vpop.eup %180  ;;  %136 = vst [vmem:[#allocation5 + $0x8] sm:$0xff] %v120_v59  ;;  %v98_v63 = vmax.f32 %v78_v60, 1e-24  ;;  %v97_v0 = vmax.f32 %v76_v61, 1e-24 }
  0xb9   :  { %v183_v1 = vpop.eup %182  ;;  %v124_v3 = vmul.f32 %v181_v62, %v297_v8 }
  0xba   :  { %v123_v4 = vmul.f32 %v183_v1, %v299_v9  ;;  %192 = vrsqrt.f32 %v98_v63 }
  0xbb   :  { %140 = vst [vmem:[#allocation5 + $0x28] sm:$0xff] %v124_v3  ;;  %194 = vrsqrt.f32 %v97_v0  ;;  %v82_v2 = vpop.xlane.xlu1 %81  ;;  %v80_v6 = vpop.xlane.xlu0 %79 }
  0xbc   :  { %v185_v5 = vpop.eup %184  ;;  %139 = vst [vmem:[#allocation5 + $0x20] sm:$0xff] %v123_v4  ;;  %v100_v7 = vmax.f32 %v82_v2, 1e-24  ;;  %v99_v10 = vmax.f32 %v80_v6, 1e-24 }
  0xbd   :  { %v187_v11 = vpop.eup %186  ;;  %v126_v14 = vmul.f32 %v185_v5, %v305_v12 }
  0xbe   :  { %v125_v15 = vmul.f32 %v187_v11, %v307_v13  ;;  %196 = vrsqrt.f32 %v100_v7 }
  0xbf   :  { %142 = vst [vmem:[#allocation5 + $0x38] sm:$0xff] %v126_v14  ;;  %198 = vrsqrt.f32 %v99_v10  ;;  %v86_v8 = vpop.xlane.xlu1 %85  ;;  %v84_v18 = vpop.xlane.xlu0 %83 }
  0xc0   :  { %v189_v9 = vpop.eup %188  ;;  %141 = vst [vmem:[#allocation5 + $0x30] sm:$0xff] %v125_v15  ;;  %v102_v19 = vmax.f32 %v86_v8, 1e-24  ;;  %v101_v22 = vmax.f32 %v84_v18, 1e-24 }
  0xc1   :  { %v191_v23 = vpop.eup %190  ;;  %v128_v26 = vmul.f32 %v189_v9, %v313_v16 }
  0xc2   :  { %v127_v27 = vmul.f32 %v191_v23, %v315_v17  ;;  %200 = vrsqrt.f32 %v102_v19 }
  0xc3   :  { %144 = vst [vmem:[#allocation5 + $0x48] sm:$0xff] %v128_v26  ;;  %202 = vrsqrt.f32 %v101_v22 }
  0xc4   :  { %v193_v12 = vpop.eup %192  ;;  %143 = vst [vmem:[#allocation5 + $0x40] sm:$0xff] %v127_v27 }
  0xc5   :  { %v195_v13 = vpop.eup %194  ;;  %v130_v30 = vmul.f32 %v193_v12, %v321_v20 }
  0xc6   :  { %v129_v31 = vmul.f32 %v195_v13, %v323_v21 }
  0xc7   :  { %146 = vst [vmem:[#allocation5 + $0x58] sm:$0xff] %v130_v30 }
  0xc8   :  { %v197_v32 = vpop.eup %196  ;;  %145 = vst [vmem:[#allocation5 + $0x50] sm:$0xff] %v129_v31 }
  0xc9   :  { %v199_v33 = vpop.eup %198  ;;  %v132_v34 = vmul.f32 %v197_v32, %v329_v24 }
  0xca   :  { %v131_v16 = vmul.f32 %v199_v33, %v331_v25 }
  0xcb   :  { %148 = vst [vmem:[#allocation5 + $0x68] sm:$0xff] %v132_v34 }
  0xcc   :  { %v201_v17 = vpop.eup %200  ;;  %147 = vst [vmem:[#allocation5 + $0x60] sm:$0xff] %v131_v16 }
  0xcd   :  { %v203_v35 = vpop.eup %202  ;;  %v134_v36 = vmul.f32 %v201_v17, %v337_v28 }
  0xce   :  { %v133_v20 = vmul.f32 %v203_v35, %v339_v29 }
  0xcf   :  { %150 = vst [vmem:[#allocation5 + $0x78] sm:$0xff] %v134_v36 }
  0xd0   :  { %149 = vst [vmem:[#allocation5 + $0x70] sm:$0xff] %v133_v20 }
  0xd1   :  { %237 = shalt.err (!%p234_p12)
}
  0xd2   :  { %s238_s24 = scalar_lea.hbm %s377_s1, 2048 }
  0xd3   :  { %p239_p13 = scmp.ne.s32.totalorder %s377_s1, %s238_s24  ;;  %p242_p0 = scmp.lt.u32.totalorder %s238_s24, %s377_s1 }
  0xd5   :  { %p244_p1 = pnand %p242_p0, %p239_p13 }
  0xd7   :  { %247 = shalt.err (!%p244_p1)
}
  0xd8   :  { %162 = dma.vmem_to_hbm [thread:$0]  %s157_s20, 2048, %s377_s1, [#allocation4], %s253_s16, %s253_s16, %s254_s17  }
  0xd9   :  { %250 = dma.done.wait [#allocation4], 2048  }
  0xda   :  { %251 = vsyncadd [#allocation4], 4294965248 }
  0xdb   :  { %166 = vsyncpa [#allocation3], 1 }
  0xdc   :  { %167 = vsyncpa [#allocation4], 1 }

</bundles_post_ra>
